<compile_context>
chip_gen: v6e
topology: v6e:2x2x1
jax: 0.10.0
libtpu: 0.0.40
codegen_flags: <defaults>
</compile_context>

<pallas_src>
import jax
import jax.numpy as jnp
from jax.experimental import pallas as pl
from jax.experimental.pallas import tpu as pltpu

IN_DIM = 28 * 28
H1, H2, H3 = 256, 128, 64
OUT_DIM = 10
OUT_PAD = 128  # lane-dense padded output width


def _round_up(n, m):
    return ((n + m - 1) // m) * m


def mlp_kernel(x_ref, w1_ref, b1_ref, w2_ref, b2_ref, w3_ref, b3_ref,
               w4_ref, b4_ref, o_ref):
    # x tile and weights are bf16 (MXU operands); accumulation and all
    # elementwise bias/ReLU math are f32 (v5e VPU has no bf16).
    h = jnp.dot(x_ref[...], w1_ref[...], preferred_element_type=jnp.float32)
    h = jnp.maximum(h + b1_ref[...], 0.0)

    h = jnp.dot(h.astype(jnp.bfloat16), w2_ref[...],
                preferred_element_type=jnp.float32)
    h = jnp.maximum(h + b2_ref[...], 0.0)

    h = jnp.dot(h.astype(jnp.bfloat16), w3_ref[...],
                preferred_element_type=jnp.float32)
    h = jnp.maximum(h + b3_ref[...], 0.0)

    h = jnp.dot(h.astype(jnp.bfloat16), w4_ref[...],
                preferred_element_type=jnp.float32)
    o_ref[...] = (h + b4_ref[...]).astype(o_ref.dtype)


def mlp_forward(x, params, *, batch_tile=256):
    """x: (B, 784) float32. Returns (B, 10) float32 logits."""
    B = x.shape[0]
    # Don't pay for a full 256-row tile when the batch is tiny; keep the
    # sublane constraint (multiple of 8) satisfied.
    batch_tile = min(batch_tile, _round_up(B, 8))
    nb = pl.cdiv(B, batch_tile)
    b_pad = nb * batch_tile

    # bf16 activations halve the x-tile DMA; pad batch to a full tile (zero rows
    # are harmless and sliced away at the end).
    x_bf = x.astype(jnp.bfloat16)
    if b_pad != B:
        x_bf = jnp.pad(x_bf, ((0, b_pad - B), (0, 0)))

    w1, w2, w3 = params["w1"], params["w2"], params["w3"]
    b1, b2, b3 = params["b1"], params["b2"], params["b3"]
    # Pad the last layer to 128 output lanes -> unmasked, lane-dense stores.
    w4 = jnp.pad(params["w4"], ((0, 0), (0, OUT_PAD - OUT_DIM)))
    b4 = jnp.pad(params["b4"], ((0, 0), (0, OUT_PAD - OUT_DIM)))

    # Weights/biases: same block for every grid step -> resident in VMEM, one DMA.
    def resident(a):
        return pl.BlockSpec(a.shape, lambda i: (0,) * a.ndim)

    flops = 2 * b_pad * (IN_DIM * H1 + H1 * H2 + H2 * H3 + H3 * OUT_PAD)
    bytes_accessed = (
        x_bf.size * 2                                           # bf16 input
        + (w1.size + w2.size + w3.size + w4.size) * 2           # bf16 weights
        + (b1.size + b2.size + b3.size + b4.size) * 4           # f32 biases
        + b_pad * OUT_PAD * 4                                   # f32 output
    )

    out = pl.pallas_call(
        mlp_kernel,
        out_shape=jax.ShapeDtypeStruct((b_pad, OUT_PAD), jnp.float32),
        grid=(nb,),
        in_specs=[
            pl.BlockSpec((batch_tile, IN_DIM), lambda i: (i, 0)),
            resident(w1), resident(b1),
            resident(w2), resident(b2),
            resident(w3), resident(b3),
            resident(w4), resident(b4),
        ],
        out_specs=pl.BlockSpec((batch_tile, OUT_PAD), lambda i: (i, 0)),
        compiler_params=pltpu.CompilerParams(
            dimension_semantics=("parallel",),
            vmem_limit_bytes=32 * 1024 * 1024,
        ),
        cost_estimate=pl.CostEstimate(
            flops=flops, transcendentals=0, bytes_accessed=bytes_accessed),
    )(x_bf, w1, b1, w2, b2, w3, b3, w4, b4)

    return out[:B, :OUT_DIM]


def init_params(key):
    """Deterministic synthetic init matching nn.Linear shapes (stored transposed).

    Weights are stored as bf16 (in_features, out_features); biases stay f32 (1, out).
    """
    dims = [(IN_DIM, H1), (H1, H2), (H2, H3), (H3, OUT_DIM)]
    params = {}
    for i, (fan_in, fan_out) in enumerate(dims, start=1):
        key, kw, kb = jax.random.split(key, 3)
        bound = 1.0 / jnp.sqrt(fan_in)
        w = jax.random.uniform(kw, (fan_in, fan_out), jnp.float32, -bound, bound)
        params[f"w{i}"] = w.astype(jnp.bfloat16)
        params[f"b{i}"] = jax.random.uniform(
            kb, (1, fan_out), jnp.float32, -bound, bound)
    return params


def mlp_reference(x, params):
    """Pure-JAX reference with the same bf16-operand / f32-accumulate numerics."""
    bf16 = jnp.bfloat16
    h = jnp.dot(x.astype(bf16), params["w1"], preferred_element_type=jnp.float32)
    h = jnp.maximum(h + params["b1"], 0.0)
    h = jnp.dot(h.astype(bf16), params["w2"], preferred_element_type=jnp.float32)
    h = jnp.maximum(h + params["b2"], 0.0)
    h = jnp.dot(h.astype(bf16), params["w3"], preferred_element_type=jnp.float32)
    h = jnp.maximum(h + params["b3"], 0.0)
    h = jnp.dot(h.astype(bf16), params["w4"], preferred_element_type=jnp.float32)
    return h + params["b4"]


if __name__ == "__main__":
    key = jax.random.PRNGKey(0)
    key, kx = jax.random.split(key)
    batch = 8
    x = jax.random.normal(kx, (batch, IN_DIM), jnp.float32)

    params = init_params(key)

    out = mlp_forward(x, params)
    out = jax.block_until_ready(out)

    ref = mlp_reference(x, params)
    assert out.shape == (batch, OUT_DIM), out.shape
    assert jnp.allclose(out, ref, atol=1e-2, rtol=1e-2), "mismatch vs reference"

    print("KERNEL_OK")
</pallas_src>

<mosaic_0001>
module attributes {stable_mosaic.version = 11 : i64} {
  func.func @mlp_kernel(%arg0: i32, %arg1: memref<8x784xbf16, #tpu.memory_space<vmem>>, %arg2: memref<784x256xbf16, #tpu.memory_space<vmem>>, %arg3: memref<1x256xf32, #tpu.memory_space<vmem>>, %arg4: memref<256x128xbf16, #tpu.memory_space<vmem>>, %arg5: memref<1x128xf32, #tpu.memory_space<vmem>>, %arg6: memref<128x64xbf16, #tpu.memory_space<vmem>>, %arg7: memref<1x64xf32, #tpu.memory_space<vmem>>, %arg8: memref<64x128xbf16, #tpu.memory_space<vmem>>, %arg9: memref<1x128xf32, #tpu.memory_space<vmem>>, %arg10: memref<8x128xf32, #tpu.memory_space<vmem>>) attributes {dimension_semantics = [#tpu.dimension_semantics<parallel>], iteration_bounds = array<i64: 1>, scalar_prefetch = 0 : i64, scratch_operands = 0 : i64, tpu.core_type = #tpu.core_type<tc>, window_params = [{transform_indices = @transform_0, window_bounds = array<i64: 8, 784>}, {pipeline_mode = #tpu.pipeline_mode<synchronous>, transform_indices = @transform_1, window_bounds = array<i64: 784, 256>}, {pipeline_mode = #tpu.pipeline_mode<synchronous>, transform_indices = @transform_2, window_bounds = array<i64: 1, 256>}, {pipeline_mode = #tpu.pipeline_mode<synchronous>, transform_indices = @transform_3, window_bounds = array<i64: 256, 128>}, {pipeline_mode = #tpu.pipeline_mode<synchronous>, transform_indices = @transform_4, window_bounds = array<i64: 1, 128>}, {pipeline_mode = #tpu.pipeline_mode<synchronous>, transform_indices = @transform_5, window_bounds = array<i64: 128, 64>}, {pipeline_mode = #tpu.pipeline_mode<synchronous>, transform_indices = @transform_6, window_bounds = array<i64: 1, 64>}, {pipeline_mode = #tpu.pipeline_mode<synchronous>, transform_indices = @transform_7, window_bounds = array<i64: 64, 128>}, {pipeline_mode = #tpu.pipeline_mode<synchronous>, transform_indices = @transform_8, window_bounds = array<i64: 1, 128>}, {transform_indices = @transform_9, window_bounds = array<i64: 8, 128>}]} {
    %c0 = arith.constant 0 : index
    %c0_0 = arith.constant 0 : index
    %0 = vector.load %arg1[%c0, %c0_0] : memref<8x784xbf16, #tpu.memory_space<vmem>>, vector<8x784xbf16>
    %c0_1 = arith.constant 0 : index
    %c0_2 = arith.constant 0 : index
    %1 = vector.load %arg2[%c0_1, %c0_2] : memref<784x256xbf16, #tpu.memory_space<vmem>>, vector<784x256xbf16>
    %cst = arith.constant dense<0.000000e+00> : vector<8x256xf32>
    %2 = tpu.matmul %0, %1, %cst {dimension_numbers = #tpu.dot_dimension_numbers<[1], [0], [0], [1], [0, 0, 1, 1], [], []>} : vector<8x784xbf16>, vector<784x256xbf16>, vector<8x256xf32> -> vector<8x256xf32>
    %c0_3 = arith.constant 0 : index
    %c0_4 = arith.constant 0 : index
    %3 = vector.load %arg3[%c0_3, %c0_4] : memref<1x256xf32, #tpu.memory_space<vmem>>, vector<1x256xf32>
    %4 = vector.broadcast %3 : vector<1x256xf32> to vector<8x256xf32>
    %5 = arith.addf %2, %4 : vector<8x256xf32>
    %cst_5 = arith.constant 0.000000e+00 : f32
    %6 = vector.broadcast %cst_5 : f32 to vector<8x256xf32>
    %7 = arith.maximumf %5, %6 : vector<8x256xf32>
    %8 = arith.truncf %7 : vector<8x256xf32> to vector<8x256xbf16>
    %c0_6 = arith.constant 0 : index
    %c0_7 = arith.constant 0 : index
    %9 = vector.load %arg4[%c0_6, %c0_7] : memref<256x128xbf16, #tpu.memory_space<vmem>>, vector<256x128xbf16>
    %cst_8 = arith.constant dense<0.000000e+00> : vector<8x128xf32>
    %10 = tpu.matmul %8, %9, %cst_8 {dimension_numbers = #tpu.dot_dimension_numbers<[1], [0], [0], [1], [0, 0, 1, 1], [], []>} : vector<8x256xbf16>, vector<256x128xbf16>, vector<8x128xf32> -> vector<8x128xf32>
    %c0_9 = arith.constant 0 : index
    %c0_10 = arith.constant 0 : index
    %11 = vector.load %arg5[%c0_9, %c0_10] : memref<1x128xf32, #tpu.memory_space<vmem>>, vector<1x128xf32>
    %12 = vector.broadcast %11 : vector<1x128xf32> to vector<8x128xf32>
    %13 = arith.addf %10, %12 : vector<8x128xf32>
    %cst_11 = arith.constant 0.000000e+00 : f32
    %14 = vector.broadcast %cst_11 : f32 to vector<8x128xf32>
    %15 = arith.maximumf %13, %14 : vector<8x128xf32>
    %16 = arith.truncf %15 : vector<8x128xf32> to vector<8x128xbf16>
    %c0_12 = arith.constant 0 : index
    %c0_13 = arith.constant 0 : index
    %17 = vector.load %arg6[%c0_12, %c0_13] : memref<128x64xbf16, #tpu.memory_space<vmem>>, vector<128x64xbf16>
    %cst_14 = arith.constant dense<0.000000e+00> : vector<8x64xf32>
    %18 = tpu.matmul %16, %17, %cst_14 {dimension_numbers = #tpu.dot_dimension_numbers<[1], [0], [0], [1], [0, 0, 1, 1], [], []>} : vector<8x128xbf16>, vector<128x64xbf16>, vector<8x64xf32> -> vector<8x64xf32>
    %c0_15 = arith.constant 0 : index
    %c0_16 = arith.constant 0 : index
    %19 = vector.load %arg7[%c0_15, %c0_16] : memref<1x64xf32, #tpu.memory_space<vmem>>, vector<1x64xf32>
    %20 = vector.broadcast %19 : vector<1x64xf32> to vector<8x64xf32>
    %21 = arith.addf %18, %20 : vector<8x64xf32>
    %cst_17 = arith.constant 0.000000e+00 : f32
    %22 = vector.broadcast %cst_17 : f32 to vector<8x64xf32>
    %23 = arith.maximumf %21, %22 : vector<8x64xf32>
    %24 = arith.truncf %23 : vector<8x64xf32> to vector<8x64xbf16>
    %c0_18 = arith.constant 0 : index
    %c0_19 = arith.constant 0 : index
    %25 = vector.load %arg8[%c0_18, %c0_19] : memref<64x128xbf16, #tpu.memory_space<vmem>>, vector<64x128xbf16>
    %cst_20 = arith.constant dense<0.000000e+00> : vector<8x128xf32>
    %26 = tpu.matmul %24, %25, %cst_20 {dimension_numbers = #tpu.dot_dimension_numbers<[1], [0], [0], [1], [0, 0, 1, 1], [], []>} : vector<8x64xbf16>, vector<64x128xbf16>, vector<8x128xf32> -> vector<8x128xf32>
    %c0_21 = arith.constant 0 : index
    %c0_22 = arith.constant 0 : index
    %27 = vector.load %arg9[%c0_21, %c0_22] : memref<1x128xf32, #tpu.memory_space<vmem>>, vector<1x128xf32>
    %28 = vector.broadcast %27 : vector<1x128xf32> to vector<8x128xf32>
    %29 = arith.addf %26, %28 : vector<8x128xf32>
    %c0_23 = arith.constant 0 : index
    %c0_24 = arith.constant 0 : index
    %30 = vector.load %arg10[%c0_23, %c0_24] : memref<8x128xf32, #tpu.memory_space<vmem>>, vector<8x128xf32>
    tpu.vector_store %arg10[%c0_23, %c0_24], %29 {strides = array<i32>} : memref<8x128xf32, #tpu.memory_space<vmem>>, vector<8x128xf32>,
    return
  }
  func.func @transform_0(%arg0: i32) -> (i32, i32) {
    %c0_i32 = arith.constant 0 : i32
    %c0_i32_0 = arith.constant 0 : i32
    return %arg0, %c0_i32 : i32, i32
  }
  func.func @transform_1(%arg0: i32) -> (i32, i32) {
    %c0_i32 = arith.constant 0 : i32
    %c0_i32_0 = arith.constant 0 : i32
    %c0_i32_1 = arith.constant 0 : i32
    return %c0_i32, %c0_i32_0 : i32, i32
  }
  func.func @transform_2(%arg0: i32) -> (i32, i32) {
    %c0_i32 = arith.constant 0 : i32
    %c0_i32_0 = arith.constant 0 : i32
    %c0_i32_1 = arith.constant 0 : i32
    return %c0_i32, %c0_i32_0 : i32, i32
  }
  func.func @transform_3(%arg0: i32) -> (i32, i32) {
    %c0_i32 = arith.constant 0 : i32
    %c0_i32_0 = arith.constant 0 : i32
    %c0_i32_1 = arith.constant 0 : i32
    return %c0_i32, %c0_i32_0 : i32, i32
  }
  func.func @transform_4(%arg0: i32) -> (i32, i32) {
    %c0_i32 = arith.constant 0 : i32
    %c0_i32_0 = arith.constant 0 : i32
    %c0_i32_1 = arith.constant 0 : i32
    return %c0_i32, %c0_i32_0 : i32, i32
  }
  func.func @transform_5(%arg0: i32) -> (i32, i32) {
    %c0_i32 = arith.constant 0 : i32
    %c0_i32_0 = arith.constant 0 : i32
    %c0_i32_1 = arith.constant 0 : i32
    return %c0_i32, %c0_i32_0 : i32, i32
  }
  func.func @transform_6(%arg0: i32) -> (i32, i32) {
    %c0_i32 = arith.constant 0 : i32
    %c0_i32_0 = arith.constant 0 : i32
    %c0_i32_1 = arith.constant 0 : i32
    return %c0_i32, %c0_i32_0 : i32, i32
  }
  func.func @transform_7(%arg0: i32) -> (i32, i32) {
    %c0_i32 = arith.constant 0 : i32
    %c0_i32_0 = arith.constant 0 : i32
    %c0_i32_1 = arith.constant 0 : i32
    return %c0_i32, %c0_i32_0 : i32, i32
  }
  func.func @transform_8(%arg0: i32) -> (i32, i32) {
    %c0_i32 = arith.constant 0 : i32
    %c0_i32_0 = arith.constant 0 : i32
    %c0_i32_1 = arith.constant 0 : i32
    return %c0_i32, %c0_i32_0 : i32, i32
  }
  func.func @transform_9(%arg0: i32) -> (i32, i32) {
    %c0_i32 = arith.constant 0 : i32
    %c0_i32_0 = arith.constant 0 : i32
    return %arg0, %c0_i32 : i32, i32
  }
}

</mosaic_0001>

<bundles_post_ra>
// kernel: tpu_custom_call.1
= control target key start
LH: loop header
LB: loop body
LE: loop exit
PB: predicated region body
PF: predicated region fallthrough
CT: control target
= control target key end

     0   :  { %14 = vsyncpa [#allocation3], 0  ;;  %s1866_s0 = inlined_call_operand.vmem [shape: bf16[8,784], index: 0, kind: input, shape index: {}]   ;;  %s1867_s1 = inlined_call_operand.hbm [shape: bf16[784,256], index: 1, kind: input, shape index: {}]   ;;  %s1868_s2 = inlined_call_operand.vmem [shape: f32[1,256], index: 2, kind: input, shape index: {}]   ;;  %s1869_s3 = inlined_call_operand.hbm [shape: bf16[256,128], index: 3, kind: input, shape index: {}]   ;;  %s1870_s4 = inlined_call_operand.vmem [shape: f32[1,128], index: 4, kind: input, shape index: {}]   ;;  %s1871_s5 = inlined_call_operand.vmem [shape: bf16[128,64], index: 5, kind: input, shape index: {}]   ;;  %s1872_s6 = inlined_call_operand.vmem [shape: f32[1,64], index: 6, kind: input, shape index: {}]   ;;  %s1873_s7 = inlined_call_operand.vmem [shape: bf16[64,128], index: 7, kind: input, shape index: {}]   ;;  %s1874_s8 = inlined_call_operand.vmem [shape: f32[1,128], index: 8, kind: input, shape index: {}]   ;;  %s1875_s9 = inlined_call_operand.hbm [shape: f32[8,128], index: 9, kind: output, shape index: {}]  }
   0x1   :  { %15 = vsyncpa [#allocation6], 0 }
   0x2   :  { %16 = vsyncpa [#allocation4], 0  ;;  %s1716_s30 = smov [#allocation2]  }
   0x3   :  { %s24_s10 = sshll.u32 %s1716_s30, 4  ;;  %s25_s10 = int_to_ptr.vmem [resolvable:$true] %s24_s10 }
   0x4   :  { %s1658_s11 = scalar_lea.vmem %s25_s10, 12544  ;;  %p1663_p1 = scmp.lt.s32.totalorder %s25_s10, %s25_s10 }
   0x5   :  { %p1659_p0 = scmp.ne.s32.totalorder %s25_s10, %s1658_s11  ;;  %p1664_p2 = scmp.lt.s32.totalorder %s1658_s11, %s1658_s11 }
   0x7   :  { %p1665_p3 = por %p1664_p2, %p1663_p1 }
   0x9   :  { %p1666_p4 = pnand %p1665_p3, %p1659_p0 }
   0xb   :  { %1669 = shalt.err (!%p1666_p4)
}
   0xc   :  { %s1717_s12 = smov 128   ;;  %s1718_s13 = smov 8  }
   0xd   :  { %30 = dma.hbm_to_vmem [thread:$0]  %s1867_s1, 12544, %s25_s10, [#allocation3], %s1717_s12, %s1717_s12, %s1718_s13  }
   0xe   :  { %s1719_s16 = smov [#allocation5]  }
   0xf   :  { %s38_s17 = sshll.u32 %s1719_s16, 4  ;;  %s39_s17 = int_to_ptr.vmem [resolvable:$true] %s38_s17 }
  0x10   :  { %s1678_s18 = scalar_lea.vmem %s39_s17, 2048  ;;  %p1683_p6 = scmp.lt.s32.totalorder %s39_s17, %s39_s17 }
  0x11   :  { %p1679_p5 = scmp.ne.s32.totalorder %s39_s17, %s1678_s18  ;;  %p1684_p7 = scmp.lt.s32.totalorder %s1678_s18, %s1678_s18 }
  0x13   :  { %p1685_p8 = por %p1684_p7, %p1683_p6 }
  0x15   :  { %p1686_p9 = pnand %p1685_p8, %p1679_p5 }
  0x17   :  { %1689 = shalt.err (!%p1686_p9)
}
  0x18   :  { %s1720_s19 = smov 64   ;;  %s1721_s20 = smov 4  }
  0x19   :  { %44 = dma.hbm_to_vmem [thread:$0]  %s1869_s3, 2048, %s39_s17, [#allocation6], %s1720_s19, %s1720_s19, %s1721_s20  }
  0x1a   :  { %1710 = dma.done.wait [#allocation3], 12544  }
  0x1b   :  { %1711 = vsyncadd [#allocation3], 4294954752 }
  0x1c   :  { %1712 = dma.done.wait [#allocation6], 2048  }
  0x1d   :  { %1713 = vsyncadd [#allocation6], 4294965248  ;;  %v1468_v0 = vld [vmem:[#allocation2 + $0x74] ss:$8 sps:$4 sm:$0xff]   ;;  %v1470_v1 = vld [vmem:[#allocation2 + $0x70] ss:$8 sps:$4 sm:$0xff]  }
  0x1e   :  { %694 = vmatprep.subr.bf16.mxu0 %v1468_v0  ;;  %v1471_v2 = vld [vmem:[#allocation2 + $0x174] ss:$8 sps:$4 sm:$0xff]   ;;  %v1473_v3 = vld [vmem:[#allocation2 + $0x170] ss:$8 sps:$4 sm:$0xff]   ;;  %v1474_v4 = vld [vmem:[#allocation2 + $0x64] ss:$8 sps:$4 sm:$0xff]  }
  0x1f   :  { %695 = vmatpush1.bf16.msra.mxu0 %v1470_v1  ;;  %v1476_v5 = vld [vmem:[#allocation2 + $0x60] ss:$8 sps:$4 sm:$0xff]   ;;  %735 = vmatprep.subr.bf16.mxu1 %v1471_v2  ;;  %v1477_v6 = vld [vmem:[#allocation2 + $0x164] ss:$8 sps:$4 sm:$0xff]   ;;  %v1480_v8 = vld [vmem:[#allocation2 + $0x54] ss:$8 sps:$4 sm:$0xff]  }
  0x20   :  { %736 = vmatpush1.bf16.msra.mxu1 %v1473_v3  ;;  %696 = vmatprep.subr.bf16.mxu0 %v1474_v4  ;;  %v1479_v7 = vld [vmem:[#allocation2 + $0x160] ss:$8 sps:$4 sm:$0xff]   ;;  %v1482_v9 = vld [vmem:[#allocation2 + $0x50] ss:$8 sps:$4 sm:$0xff]   ;;  %v1483_v10 = vld [vmem:[#allocation2 + $0x154] ss:$8 sps:$4 sm:$0xff]  }
  0x21   :  { %737 = vmatprep.subr.bf16.mxu1 %v1477_v6  ;;  %v1486_v11 = vld [vmem:[#allocation2 + $0x44] ss:$8 sps:$4 sm:$0xff]   ;;  %v1485_v12 = vld [vmem:[#allocation2 + $0x150] ss:$8 sps:$4 sm:$0xff]   ;;  %v1488_v14 = vld [vmem:[#allocation2 + $0x40] ss:$8 sps:$4 sm:$0xff]  }
  0x22   :  { %v1489_v13 = vld [vmem:[#allocation2 + $0x144] ss:$8 sps:$4 sm:$0xff]   ;;  %v1492_v15 = vld [vmem:[#allocation2 + $0x34] ss:$8 sps:$4 sm:$0xff]   ;;  %v1491_v16 = vld [vmem:[#allocation2 + $0x140] ss:$8 sps:$4 sm:$0xff]  }
  0x23   :  { %697 = vmatpush1.bf16.msra.mxu0 %v1476_v5  ;;  %v1495_v17 = vld [vmem:[#allocation2 + $0x134] ss:$8 sps:$4 sm:$0xff]   ;;  %v1494_v18 = vld [vmem:[#allocation2 + $0x30] ss:$8 sps:$4 sm:$0xff]   ;;  %v1498_v19 = vld [vmem:[#allocation2 + $0x24] ss:$8 sps:$4 sm:$0xff]  }
  0x24   :  { %698 = vmatprep.subr.bf16.mxu0 %v1480_v8  ;;  %738 = vmatpush1.bf16.msra.mxu1 %v1479_v7  ;;  %v1497_v20 = vld [vmem:[#allocation2 + $0x130] ss:$8 sps:$4 sm:$0xff]   ;;  %v1501_v21 = vld [vmem:[#allocation2 + $0x124] ss:$8 sps:$4 sm:$0xff]   ;;  %v1500_v22 = vld [vmem:[#allocation2 + $0x20] ss:$8 sps:$4 sm:$0xff]  }
  0x25   :  { %739 = vmatprep.subr.bf16.mxu1 %v1483_v10  ;;  %v1504_v23 = vld [vmem:[#allocation2 + $0x14] ss:$8 sps:$4 sm:$0xff]   ;;  %v1503_v24 = vld [vmem:[#allocation2 + $0x120] ss:$8 sps:$4 sm:$0xff]   ;;  %v1506_v26 = vld [vmem:[#allocation2 + $0x10] ss:$8 sps:$4 sm:$0xff]  }
  0x26   :  { %v1507_v25 = vld [vmem:[#allocation2 + $0x114] ss:$8 sps:$4 sm:$0xff]   ;;  %v1510_v27 = vld [vmem:[#allocation2 + $0x4] ss:$8 sps:$4 sm:$0xff]   ;;  %v1509_v28 = vld [vmem:[#allocation2 + $0x110] ss:$8 sps:$4 sm:$0xff]  }
  0x27   :  { %699 = vmatpush1.bf16.msra.mxu0 %v1482_v9  ;;  %v1513_v29 = vld [vmem:[#allocation2 + $0x104] ss:$8 sps:$4 sm:$0xff]   ;;  %v1512_v30 = vld [vmem:[#allocation2] ss:$8 sps:$4 sm:$0xff]   ;;  %v1516_v31 = vld [vmem:[#allocation2 + $0xf4] ss:$8 sps:$4 sm:$0xff]  }
  0x28   :  { %700 = vmatprep.subr.bf16.mxu0 %v1486_v11  ;;  %740 = vmatpush1.bf16.msra.mxu1 %v1485_v12  ;;  %v1515_v32 = vld [vmem:[#allocation2 + $0x100] ss:$8 sps:$4 sm:$0xff]   ;;  %v1519_v33 = vld [vmem:[#allocation2 + $0x1f4] ss:$8 sps:$4 sm:$0xff]   ;;  %v1518_v34 = vld [vmem:[#allocation2 + $0xf0] ss:$8 sps:$4 sm:$0xff]  }
  0x29   :  { %741 = vmatprep.subr.bf16.mxu1 %v1489_v13  ;;  %v1522_v35 = vld [vmem:[#allocation2 + $0xe4] ss:$8 sps:$4 sm:$0xff]   ;;  %v1521_v36 = vld [vmem:[#allocation2 + $0x1f0] ss:$8 sps:$4 sm:$0xff]   ;;  %v1524_v38 = vld [vmem:[#allocation2 + $0xe0] ss:$8 sps:$4 sm:$0xff]  }
  0x2a   :  { %v1525_v37 = vld [vmem:[#allocation2 + $0x1e4] ss:$8 sps:$4 sm:$0xff]   ;;  %v1528_v39 = vld [vmem:[#allocation2 + $0xd4] ss:$8 sps:$4 sm:$0xff]   ;;  %v1527_v40 = vld [vmem:[#allocation2 + $0x1e0] ss:$8 sps:$4 sm:$0xff]  }
  0x2b   :  { %701 = vmatpush1.bf16.msra.mxu0 %v1488_v14  ;;  %v1531_v41 = vld [vmem:[#allocation2 + $0x1d4] ss:$8 sps:$4 sm:$0xff]   ;;  %v1530_v42 = vld [vmem:[#allocation2 + $0xd0] ss:$8 sps:$4 sm:$0xff]   ;;  %v1534_v43 = vld [vmem:[#allocation2 + $0xc4] ss:$8 sps:$4 sm:$0xff]  }
  0x2c   :  { %702 = vmatprep.subr.bf16.mxu0 %v1492_v15  ;;  %742 = vmatpush1.bf16.msra.mxu1 %v1491_v16  ;;  %v1533_v44 = vld [vmem:[#allocation2 + $0x1d0] ss:$8 sps:$4 sm:$0xff]   ;;  %v1537_v45 = vld [vmem:[#allocation2 + $0x1c4] ss:$8 sps:$4 sm:$0xff]   ;;  %v1536_v47 = vld [vmem:[#allocation2 + $0xc0] ss:$8 sps:$4 sm:$0xff]  }
  0x2d   :  { %743 = vmatprep.subr.bf16.mxu1 %v1495_v17  ;;  %v62_v46 = vld [vmem:[%s1866_s0] sm:$0xff]  ;;  %v1540_v49 = vld [vmem:[#allocation2 + $0xb4] ss:$8 sps:$4 sm:$0xff]   ;;  %v63_v50 = vld [vmem:[%s1866_s0 + $0x8] sm:$0xff]  ;;  %vm690_vm0 = vcmask 130048   ;;  %v1722_v16 = vmov 0  }
  0x2e   :  { %v1253_v48 = vcombine.high %v62_v46, %v62_v46  ;;  %v1539_v51 = vld [vmem:[#allocation2 + $0x1c0] ss:$8 sps:$4 sm:$0xff]   ;;  %v1255_v52 = vcombine.high %v63_v50, %v63_v50  ;;  %v1543_v53 = vld [vmem:[#allocation2 + $0x1b4] ss:$8 sps:$4 sm:$0xff]   ;;  %v1542_v54 = vld [vmem:[#allocation2 + $0xb0] ss:$8 sps:$4 sm:$0xff]   ;;  %v1252_v5 = vcombine.low %v62_v46, %v62_v46  ;;  %v1254_v7 = vcombine.low %v63_v50, %v63_v50 }
  0x2f   :  { %703 = vmatpush1.bf16.msra.mxu0 %v1494_v18  ;;  %v1546_v55 = vld [vmem:[#allocation2 + $0xa4] ss:$8 sps:$4 sm:$0xff]   ;;  %v1545_v56 = vld [vmem:[#allocation2 + $0x1b0] ss:$8 sps:$4 sm:$0xff]   ;;  %v1548_v58 = vld [vmem:[#allocation2 + $0xa0] ss:$8 sps:$4 sm:$0xff]  }
  0x30   :  { %704 = vmatprep.subr.bf16.mxu0 %v1498_v19  ;;  %744 = vmatpush1.bf16.msra.mxu1 %v1497_v20  ;;  %v1549_v57 = vld [vmem:[#allocation2 + $0x1a4] ss:$8 sps:$4 sm:$0xff]   ;;  %v1552_v59 = vld [vmem:[#allocation2 + $0x94] ss:$8 sps:$4 sm:$0xff]   ;;  %v1551_v60 = vld [vmem:[#allocation2 + $0x1a0] ss:$8 sps:$4 sm:$0xff]  }
  0x31   :  { %745 = vmatprep.subr.bf16.mxu1 %v1501_v21  ;;  %726 = vmatprep.mubr.bf16.mxu0 %v1253_v48  ;;  %v1555_v61 = vld [vmem:[#allocation2 + $0x194] ss:$8 sps:$4 sm:$0xff]   ;;  %v1554_v62 = vld [vmem:[#allocation2 + $0x90] ss:$8 sps:$4 sm:$0xff]   ;;  %v1558_v63 = vld [vmem:[#allocation2 + $0x84] ss:$8 sps:$4 sm:$0xff]  }
  0x32   :  { %767 = vmatprep.mubr.bf16.mxu1 %v1255_v52  ;;  %v1557_v0 = vld [vmem:[#allocation2 + $0x190] ss:$8 sps:$4 sm:$0xff]   ;;  %v1561_v1 = vld [vmem:[#allocation2 + $0x184] ss:$8 sps:$4 sm:$0xff]   ;;  %v1560_v2 = vld [vmem:[#allocation2 + $0x80] ss:$8 sps:$4 sm:$0xff]  }
  0x33   :  { %705 = vmatpush1.bf16.msra.mxu0 %v1500_v22  ;;  %v1568_v3 = vld [vmem:[#allocation2 + $0x274] ss:$8 sps:$4 sm:$0xff]   ;;  %v1565_v4 = vld [vmem:[#allocation2 + $0x180] ss:$8 sps:$4 sm:$0xff]   ;;  %v1566_v6 = vld [vmem:[#allocation2 + $0x270] ss:$8 sps:$4 sm:$0xff]  }
  0x34   :  { %706 = vmatprep.subr.bf16.mxu0 %v1504_v23  ;;  %746 = vmatpush1.bf16.msra.mxu1 %v1503_v24  ;;  %v1573_v8 = vld [vmem:[#allocation2 + $0x264] ss:$8 sps:$4 sm:$0xff]   ;;  %v1613_v10 = vld [vmem:[#allocation2 + $0x300] ss:$8 sps:$4 sm:$0xff]   ;;  %v1791_v12 = vld [vmem:[%s1866_s0 + $0x10] sm:$0xff]  ;;  %vm1724_vm1 = vmmov 0  }
  0x35   :  { %747 = vmatprep.subr.bf16.mxu1 %v1507_v25  ;;  %v1615_v9 = vld [vmem:[#allocation2 + $0x304] ss:$8 sps:$4 sm:$0xff]   ;;  %v1571_v11 = vld [vmem:[#allocation2 + $0x260] ss:$8 sps:$4 sm:$0xff]   ;;  %v1576_v13 = vld [vmem:[#allocation2 + $0x254] ss:$8 sps:$4 sm:$0xff]   ;;  %v1257_v14 = vcombine.high %v1791_v12, %v1791_v12 }
  0x36   :  { %v1574_v15 = vld [vmem:[#allocation2 + $0x250] ss:$8 sps:$4 sm:$0xff]   ;;  %v1579_v17 = vld [vmem:[#allocation2 + $0x244] ss:$8 sps:$4 sm:$0xff]   ;;  %v1577_v19 = vld [vmem:[#allocation2 + $0x240] ss:$8 sps:$4 sm:$0xff]  }
  0x37   :  { %707 = vmatpush1.bf16.msra.mxu0 %v1506_v26  ;;  %v1619_v18 = vld [vmem:[%s1866_s0 + $0x18] ss:$0 sps:$4 sm:$0xff]   ;;  %v1582_v20 = vld [vmem:[#allocation2 + $0x234] ss:$8 sps:$4 sm:$0xff]   ;;  %v1585_v22 = vld [vmem:[#allocation2 + $0x224] ss:$8 sps:$4 sm:$0xff]  }
  0x38   :  { %708 = vmatprep.subr.bf16.mxu0 %v1510_v27  ;;  %748 = vmatpush1.bf16.msra.mxu1 %v1509_v28  ;;  %v1580_v21 = vld [vmem:[#allocation2 + $0x230] ss:$8 sps:$4 sm:$0xff]   ;;  %v1583_v23 = vld [vmem:[#allocation2 + $0x220] ss:$8 sps:$4 sm:$0xff]   ;;  %v1588_v24 = vld [vmem:[#allocation2 + $0x214] ss:$8 sps:$4 sm:$0xff]  }
  0x39   :  { %749 = vmatprep.subr.bf16.mxu1 %v1513_v29  ;;  %v1586_v25 = vld [vmem:[#allocation2 + $0x210] ss:$8 sps:$4 sm:$0xff]   ;;  %v1591_v26 = vld [vmem:[#allocation2 + $0x204] ss:$8 sps:$4 sm:$0xff]   ;;  %v1589_v27 = vld [vmem:[#allocation2 + $0x200] ss:$8 sps:$4 sm:$0xff]  }
  0x3a   :  { %v1594_v28 = vld [vmem:[#allocation2 + $0x2f4] ss:$8 sps:$4 sm:$0xff]   ;;  %v1592_v29 = vld [vmem:[#allocation2 + $0x2f0] ss:$8 sps:$4 sm:$0xff]   ;;  %v1623_v46 = vld [vmem:[#allocation5 + $0x38] sm:$0xff]   ;;  %vm1191_vm2 = vcmask 523264  }
  0x3b   :  { %709 = vmatpush1.bf16.msra.mxu0 %v1512_v30  ;;  %v1597_v30 = vld [vmem:[#allocation2 + $0x2e4] ss:$8 sps:$4 sm:$0xff]   ;;  %v1627_v50 = vld [vmem:[#allocation5 + $0x28] sm:$0xff]   ;;  %v1629_v52 = vld [vmem:[#allocation5 + $0x20] sm:$0xff]   ;;  %s1725_s11 = smov [#allocation7]  }
  0x3c   :  { %710 = vmatprep.subr.bf16.mxu0 %v1516_v31  ;;  %750 = vmatpush1.bf16.msra.mxu1 %v1515_v32  ;;  %v1595_v31 = vld [vmem:[#allocation2 + $0x2e0] ss:$8 sps:$4 sm:$0xff]   ;;  %v1600_v32 = vld [vmem:[#allocation2 + $0x2d4] ss:$8 sps:$4 sm:$0xff]  }
  0x3d   :  { %751 = vmatprep.subr.bf16.mxu1 %v1519_v33  ;;  %v1598_v33 = vld [vmem:[#allocation2 + $0x2d0] ss:$8 sps:$4 sm:$0xff]   ;;  %v1625_v48 = vld [vmem:[#allocation5 + $0x30] sm:$0xff]  }
  0x3f   :  { %711 = vmatpush2.bf16.msra.mxu0 %v1518_v34  ;;  %v1603_v34 = vld [vmem:[#allocation2 + $0x2c4] ss:$8 sps:$4 sm:$0xff]  }
  0x40   :  { %712 = vmatprep.subr.bf16.mxu0 %v1522_v35  ;;  %752 = vmatpush2.bf16.msra.mxu1 %v1521_v36  ;;  %v1601_v35 = vld [vmem:[#allocation2 + $0x2c0] ss:$8 sps:$4 sm:$0xff]   ;;  %v1606_v36 = vld [vmem:[#allocation2 + $0x2b4] ss:$8 sps:$4 sm:$0xff]  }
  0x41   :  { %753 = vmatprep.subr.bf16.mxu1 %v1525_v37  ;;  %v1604_v37 = vld [vmem:[#allocation2 + $0x2b0] ss:$8 sps:$4 sm:$0xff]  }
  0x43   :  { %713 = vmatpush2.bf16.msra.mxu0 %v1524_v38  ;;  %v1609_v38 = vld [vmem:[#allocation2 + $0x2a4] ss:$8 sps:$4 sm:$0xff]  }
  0x44   :  { %714 = vmatprep.subr.bf16.mxu0 %v1528_v39  ;;  %754 = vmatpush2.bf16.msra.mxu1 %v1527_v40  ;;  %v1607_v39 = vld [vmem:[#allocation2 + $0x2a0] ss:$8 sps:$4 sm:$0xff]   ;;  %v1612_v40 = vld [vmem:[#allocation2 + $0x294] ss:$8 sps:$4 sm:$0xff]  }
  0x45   :  { %755 = vmatprep.subr.bf16.mxu1 %v1531_v41  ;;  %v1610_v41 = vld [vmem:[#allocation2 + $0x290] ss:$8 sps:$4 sm:$0xff]  }
  0x47   :  { %715 = vmatpush2.bf16.msra.mxu0 %v1530_v42  ;;  %v1618_v42 = vld [vmem:[#allocation2 + $0x284] ss:$8 sps:$4 sm:$0xff]  }
  0x48   :  { %716 = vmatprep.subr.bf16.mxu0 %v1534_v43  ;;  %756 = vmatpush2.bf16.msra.mxu1 %v1533_v44  ;;  %v1616_v43 = vld [vmem:[#allocation2 + $0x280] ss:$8 sps:$4 sm:$0xff]   ;;  %v1256_v44 = vcombine.low %v1791_v12, %v1791_v12 }
  0x49   :  { %757 = vmatprep.subr.bf16.mxu1 %v1537_v45  ;;  %v1622_v45 = vld [vmem:[#allocation5 + $0x78] sm:$0xff]  }
  0x4b   :  { %717 = vmatpush2.bf16.msra.mxu0 %v1536_v47  ;;  %v1624_v47 = vld [vmem:[#allocation5 + $0x70] sm:$0xff]  }
  0x4c   :  { %718 = vmatprep.subr.bf16.mxu0 %v1540_v49  ;;  %758 = vmatpush2.bf16.msra.mxu1 %v1539_v51  ;;  %v1626_v49 = vld [vmem:[#allocation5 + $0x68] sm:$0xff]   ;;  %v1628_v51 = vld [vmem:[#allocation5 + $0x60] sm:$0xff]  }
  0x4d   :  { %759 = vmatprep.subr.bf16.mxu1 %v1543_v53  ;;  %v1630_v53 = vld [vmem:[#allocation5 + $0x58] sm:$0xff]  }
  0x4f   :  { %719 = vmatpush2.bf16.msra.mxu0 %v1542_v54  ;;  %v1631_v54 = vld [vmem:[#allocation5 + $0x18] sm:$0xff]  }
  0x50   :  { %720 = vmatprep.subr.bf16.mxu0 %v1546_v55  ;;  %760 = vmatpush2.bf16.msra.mxu1 %v1545_v56  ;;  %v1632_v55 = vld [vmem:[#allocation5 + $0x50] sm:$0xff]  }
  0x51   :  { %761 = vmatprep.subr.bf16.mxu1 %v1549_v57  ;;  %v1633_v56 = vld [vmem:[#allocation5 + $0x10] sm:$0xff]   ;;  %v1634_v57 = vld [vmem:[#allocation5 + $0x48] sm:$0xff]  }
  0x53   :  { %721 = vmatpush2.bf16.msra.mxu0 %v1548_v58  ;;  %v1635_v58 = vld [vmem:[#allocation5 + $0x8] sm:$0xff]  }
  0x54   :  { %722 = vmatprep.subr.bf16.mxu0 %v1552_v59  ;;  %762 = vmatpush2.bf16.msra.mxu1 %v1551_v60  ;;  %v1636_v59 = vld [vmem:[#allocation5 + $0x40] sm:$0xff]  }
  0x55   :  { %763 = vmatprep.subr.bf16.mxu1 %v1555_v61  ;;  %v1637_v60 = vld [vmem:[#allocation5] sm:$0xff]   ;;  %v1723_v61 = vmov 0.0  }
  0x57   :  { %723 = vmatpush2.bf16.msra.mxu0 %v1554_v62 }
  0x58   :  { %724 = vmatprep.subr.bf16.mxu0 %v1558_v63  ;;  %764 = vmatpush2.bf16.msra.mxu1 %v1557_v0 }
  0x59   :  { %765 = vmatprep.subr.bf16.mxu1 %v1561_v1 }
  0x5b   :  { %725 = vmatpush2.bf16.msra.mxu0 %v1560_v2 }
  0x5c   :  { %776 = vmatprep.subr.bf16.mxu0 %v1568_v3  ;;  %766 = vmatpush2.bf16.msra.mxu1 %v1565_v4 }
  0x5d   :  { %831 = vmatprep.subr.bf16.mxu1 %v1615_v9 }
  0x5e   :  { %727 = vmatmul.mubr.bf16.vlgmr.msra.gmra.mxu0 %v1252_v5 }
  0x5f   :  { %777 = vmatpush1.bf16.msra.mxu0 %v1566_v6  ;;  %768 = vmatmul.mubr.bf16.vlgmr.msra.gmra.mxu1 %v1254_v7 }
  0x60   :  { %778 = vmatprep.subr.bf16.mxu0 %v1573_v8  ;;  %832 = vmatpush1.bf16.msra.mxu1 %v1613_v10  ;;  %v166_v10 = vlaneseq }
  0x61   :  { %849 = vmatprep.mubr.bf16.mxu1 %v1722_v16  ;;  %808 = vmatprep.mubr.bf16.mxu0 %v1257_v14 }
  0x62   :  { %1390 = vmatprep.subr.bf16.mxu1 %v1622_v45 }
  0x63   :  { %779 = vmatpush1.bf16.msra.mxu0 %v1571_v11  ;;  %v167_v11 = vshrl.u32 %v166_v10, 7 }
  0x64   :  { %780 = vmatprep.subr.bf16.mxu0 %v1576_v13  ;;  %v164_v13 = vld [vmem:[%s1868_s2] sm:$0x3] }
  0x65   :  { %v168_v12 = vsub.s32 0, %v167_v11  ;;  %v172_v14 = vsub.s32 1, %v167_v11 }
  0x67   :  { %781 = vmatpush1.bf16.msra.mxu0 %v1574_v15  ;;  %1357 = vmatmul.mubr.msk.bf16.vlgmr.msra.gmra.mxu1 %vm690_vm0, %v1619_v18  ;;  %v169_v15 = vrot.slane %v164_v13, %v168_v12  ;;  %v173_v16 = vrot.slane %v164_v13, %v172_v14 }
  0x68   :  { %782 = vmatprep.subr.bf16.mxu0 %v1579_v17  ;;  %1391 = vmatpush3.bf16.msra.mxu1 %v1623_v46 }
  0x69   :  { %1392 = vmatprep.subr.bf16.mxu1 %v1624_v47 }
  0x6b   :  { %783 = vmatpush1.bf16.msra.mxu0 %v1577_v19 }
  0x6c   :  { %784 = vmatprep.subr.bf16.mxu0 %v1582_v20  ;;  %1393 = vmatpush3.bf16.msra.mxu1 %v1625_v48 }
  0x6d   :  { %1394 = vmatprep.subr.bf16.mxu1 %v1626_v49 }
  0x6f   :  { %785 = vmatpush1.bf16.msra.mxu0 %v1580_v21 }
  0x70   :  { %786 = vmatprep.subr.bf16.mxu0 %v1585_v22  ;;  %1395 = vmatpush3.bf16.msra.mxu1 %v1627_v50 }
  0x71   :  { %1396 = vmatprep.subr.bf16.mxu1 %v1628_v51 }
  0x73   :  { %787 = vmatpush1.bf16.msra.mxu0 %v1583_v23 }
  0x74   :  { %788 = vmatprep.subr.bf16.mxu0 %v1588_v24  ;;  %1397 = vmatpush3.bf16.msra.mxu1 %v1629_v52  ;;  %v1648_v52 = vld [vmem:[%s1873_s7 + $0x8] sm:$0xff]  }
  0x75   :  { %1398 = vmatprep.subr.bf16.mxu1 %v1630_v53  ;;  %v1649_v53 = vld [vmem:[%s1873_s7] sm:$0xff]  }
  0x77   :  { %789 = vmatpush1.bf16.msra.mxu0 %v1586_v25 }
  0x78   :  { %790 = vmatprep.subr.bf16.mxu0 %v1591_v26  ;;  %1399 = vmatpush3.bf16.msra.mxu1 %v1631_v54  ;;  %v1375_v54 = vld [vmem:[%s1872_s6] ss:$0 sm:$0xff] }
  0x79   :  { %1400 = vmatprep.subr.bf16.mxu1 %v1632_v55 }
  0x7b   :  { %791 = vmatpush1.bf16.msra.mxu0 %v1589_v27 }
  0x7c   :  { %792 = vmatprep.subr.bf16.mxu0 %v1594_v28  ;;  %1401 = vmatpush3.bf16.msra.mxu1 %v1633_v56 }
  0x7d   :  { %1402 = vmatprep.subr.bf16.mxu1 %v1634_v57 }
  0x7f   :  { %793 = vmatpush2.bf16.msra.mxu0 %v1592_v29 }
  0x80   :  { %794 = vmatprep.subr.bf16.mxu0 %v1597_v30  ;;  %1403 = vmatpush3.bf16.msra.mxu1 %v1635_v58 }
  0x81   :  { %1404 = vmatprep.subr.bf16.mxu1 %v1636_v59 }
  0x83   :  { %795 = vmatpush2.bf16.msra.mxu0 %v1595_v31 }
  0x84   :  { %796 = vmatprep.subr.bf16.mxu0 %v1600_v32  ;;  %1405 = vmatpush3.bf16.msra.mxu1 %v1637_v60  ;;  %v1638_v32 = vld [vmem:[%s1871_s5 + $0x38] sm:$0xff]  }
  0x85   :  { %1426 = vmatprep.subr.bf16.mxu1 %v1723_v61 }
  0x87   :  { %797 = vmatpush2.bf16.msra.mxu0 %v1598_v33 }
  0x88   :  { %798 = vmatprep.subr.bf16.mxu0 %v1603_v34  ;;  %v1639_v34 = vld [vmem:[%s1871_s5 + $0x30] sm:$0xff]  }
  0x8b   :  { %799 = vmatpush2.bf16.msra.mxu0 %v1601_v35  ;;  %v1640_v35 = vld [vmem:[%s1871_s5 + $0x28] sm:$0xff]  }
  0x8c   :  { %800 = vmatprep.subr.bf16.mxu0 %v1606_v36  ;;  %v1641_v36 = vld [vmem:[%s1871_s5 + $0x20] sm:$0xff]  }
  0x8f   :  { %801 = vmatpush2.bf16.msra.mxu0 %v1604_v37  ;;  %v1642_v37 = vld [vmem:[%s1871_s5 + $0x18] sm:$0xff]  }
  0x90   :  { %802 = vmatprep.subr.bf16.mxu0 %v1609_v38  ;;  %v1643_v38 = vld [vmem:[%s1871_s5 + $0x10] sm:$0xff]  }
  0x93   :  { %803 = vmatpush2.bf16.msra.mxu0 %v1607_v39  ;;  %v1644_v39 = vld [vmem:[%s1871_s5 + $0x8] sm:$0xff]  }
  0x94   :  { %804 = vmatprep.subr.bf16.mxu0 %v1612_v40  ;;  %v1645_v40 = vld [vmem:[%s1871_s5] sm:$0xff]  }
  0x97   :  { %805 = vmatpush2.bf16.msra.mxu0 %v1610_v41  ;;  %v1646_v41 = vld [vmem:[%s1873_s7 + $0x18] sm:$0xff]  }
  0x98   :  { %806 = vmatprep.subr.bf16.mxu0 %v1618_v42  ;;  %v1647_v42 = vld [vmem:[%s1873_s7 + $0x10] sm:$0xff]   ;;  %s1242_s7 = sshll.u32 %s1725_s11, 4  ;;  %s1243_s7 = int_to_ptr.vmem [resolvable:$true] %s1242_s7 }
  0x99   :  { %s1690_s6 = scalar_lea.vmem %s1243_s7, 128  ;;  %p1695_p11 = scmp.lt.s32.totalorder %s1243_s7, %s1243_s7 }
  0x9a   :  { %p1691_p10 = scmp.ne.s32.totalorder %s1243_s7, %s1690_s6  ;;  %p1696_p12 = scmp.lt.s32.totalorder %s1690_s6, %s1690_s6 }
  0x9b   :  { %807 = vmatpush2.bf16.msra.mxu0 %v1616_v43 }
  0x9c   :  { %1446 = vmatprep.subr.bf16.mxu0 %v1723_v61  ;;  %p1697_p13 = por %p1696_p12, %p1695_p11 }
  0x9e   :  { %809 = vmatmul.mubr.bf16.vlgmr.msra.gmra.mxu0 %v1256_v44  ;;  %v1358_v44 = vld [vmem:[%s1870_s4] ss:$0 sm:$0xff]  ;;  %p1698_p0 = pnand %p1697_p13, %p1691_p10 }
  0x9f   :  { %1454 = vmatprep.mubr.msk.bf16.mxu0 %vm1724_vm1, %v1723_v61  ;;  %1447 = vmatpush3.bf16.msra.mxu0 %v1646_v41 }
  0xa0   :  { %1448 = vmatprep.subr.bf16.mxu0 %v1723_v61 }
  0xa3   :  { %1449 = vmatpush3.bf16.msra.mxu0 %v1647_v42 }
  0xa4   :  { %1450 = vmatprep.subr.bf16.mxu0 %v1723_v61 }
  0xa7   :  { %1451 = vmatpush3.bf16.msra.mxu0 %v1648_v52 }
  0xa8   :  { %1452 = vmatprep.subr.bf16.mxu0 %v1723_v61 }
  0xab   :  { %1453 = vmatpush3.bf16.msra.mxu0 %v1649_v53 }
 0x11e   :  { %v728_v62 = vpop.f32.mrf.mxu0 }
 0x11f   :  { %v769_v0 = vpop.f32.mrf.mxu1  ;;  %v729_v17 = vadd.f32 %v728_v62, %v169_v15 }
 0x120   :  { %v730_v63 = vpop.f32.mrf.mxu0 }
 0x121   :  { %v771_v2 = vpop.f32.mrf.mxu1  ;;  %v731_v18 = vadd.f32 %v730_v63, %v173_v16  ;;  %v770_v19 = vadd.f32 %v769_v0, %v729_v17 }
 0x122   :  { %v732_v1 = vpop.f32.mrf.mxu0 }
 0x123   :  { %v773_v4 = vpop.f32.mrf.mxu1  ;;  %v772_v21 = vadd.f32 %v771_v2, %v731_v18 }
 0x124   :  { %v733_v3 = vpop.f32.mrf.mxu0 }
 0x125   :  { %v774_v5 = vpop.f32.mrf.mxu1 }
 0x127   :  { %v851_v6 = vpop.f32.mrf.mxu1 }
 0x129   :  { %v853_v7 = vpop.f32.mrf.mxu1 }
 0x12b   :  { %v855_v8 = vpop.f32.mrf.mxu1 }
 0x12d   :  { %v856_v9 = vpop.f32.mrf.mxu1 }
 0x15e   :  { %v810_v20 = vpop.f32.mrf.mxu0 }
 0x15f   :  { %v811_v22 = vadd.f32 %v810_v20, %v770_v19 }
 0x160   :  { %v812_v23 = vpop.f32.mrf.mxu0 }
 0x161   :  { %v852_v24 = vadd.f32 %v851_v6, %v811_v22  ;;  %v813_v25 = vadd.f32 %v812_v23, %v772_v21 }
 0x162   :  { %v814_v26 = vpop.f32.mrf.mxu0 }
 0x163   :  { %v854_v27 = vadd.f32 %v853_v7, %v813_v25  ;;  %v858_v28 = vmax.f32 %v852_v24, 0.0 }
 0x164   :  { %v815_v29 = vpop.f32.mrf.mxu0 }
 0x165   :  { %v859_v30 = vmax.f32 %v854_v27, 0.0  ;;  %v860_v33 = vpack.c.bf16 %v858_v28, %v858_v28 }
 0x167   :  { %v861_v31 = vpack.c.bf16 %v859_v30, %v859_v30 }
 0x169   :  { %1029 = vmatprep.mubr.bf16.mxu1 %v861_v31 }
 0x16a   :  { %1030 = vmatmul.mubr.bf16.vlgmr.msra.gmra.mxu1 %v860_v33 }
 0x16b   :  { %1427 = vmatpush3.bf16.msra.mxu1 %v1638_v32  ;;  %1442 = vmatprep.mubr.msk.bf16.mxu1 %vm1724_vm1, %v1723_v61 }
 0x16c   :  { %1428 = vmatprep.subr.bf16.mxu1 %v1723_v61 }
 0x16f   :  { %1429 = vmatpush3.bf16.msra.mxu1 %v1639_v34 }
 0x170   :  { %1430 = vmatprep.subr.bf16.mxu1 %v1723_v61 }
 0x173   :  { %1431 = vmatpush3.bf16.msra.mxu1 %v1640_v35 }
 0x174   :  { %1432 = vmatprep.subr.bf16.mxu1 %v1723_v61 }
 0x177   :  { %1433 = vmatpush3.bf16.msra.mxu1 %v1641_v36 }
 0x178   :  { %1434 = vmatprep.subr.bf16.mxu1 %v1723_v61 }
 0x17b   :  { %1435 = vmatpush3.bf16.msra.mxu1 %v1642_v37 }
 0x17c   :  { %1436 = vmatprep.subr.bf16.mxu1 %v1723_v61 }
 0x17f   :  { %1437 = vmatpush3.bf16.msra.mxu1 %v1643_v38 }
 0x180   :  { %1438 = vmatprep.subr.bf16.mxu1 %v1723_v61 }
 0x183   :  { %1439 = vmatpush3.bf16.msra.mxu1 %v1644_v39 }
 0x184   :  { %1440 = vmatprep.subr.bf16.mxu1 %v1723_v61  ;;  %v1384_v61 = vld [vmem:[%s1874_s8] ss:$0 sm:$0xff] }
 0x187   :  { %1441 = vmatpush3.bf16.msra.mxu1 %v1645_v40 }
 0x22a   :  { %v1406_v43 = vpop.f32.mrf.mxu1 }
 0x22c   :  { %v1407_v45 = vpop.f32.mrf.mxu1 }
 0x22d   :  { %v1408_v46 = vadd.f32 %v1407_v45, %v1406_v43 }
 0x22e   :  { %v1409_v47 = vpop.f32.mrf.mxu1 }
 0x22f   :  { %v1032_v48 = vadd.f32 %v1408_v46, %v1358_v44 }
 0x230   :  { %v1410_v49 = vpop.f32.mrf.mxu1 }
 0x231   :  { %v1037_v50 = vmax.f32 %v1032_v48, 0.0 }
 0x233   :  { %v1038_v51 = vpack.c.bf16 %v1037_v50, %v1037_v50 }
 0x235   :  { %1443 = vmatmul.mubr.bf16.vlgmr.msra.gmra.mxu1 %v1038_v51 }
 0x2f5   :  { %v1144_v55 = vpop.f32.mrf.mxu1 }
 0x2f6   :  { %v1145_v56 = vadd.f32 %v1375_v54, %v1144_v55 }
 0x2f7   :  { %v1444_v57 = vpop.f32.mrf.mxu1 }
 0x2f8   :  { %v1150_v58 = vmax.f32 %v1145_v56, 0.0 }
 0x2f9   :  { %v1147_v59 = vpop.f32.mrf.mxu1 }
 0x2fa   :  { %v1151_v60 = vpack.c.bf16 %v1150_v58, %v1150_v58 }
 0x2fb   :  { %v1445_v62 = vpop.f32.mrf.mxu1 }
 0x2fc   :  { %1455 = vmatmul.mubr.msk.bf16.vlgmr.msra.gmra.mxu0 %vm1191_vm2, %v1151_v60 }
 0x3bc   :  { %v1229_v63 = vpop.f32.mrf.mxu0 }
 0x3bd   :  { %v1230_v0 = vadd.f32 %v1384_v61, %v1229_v63 }
 0x3be   :  { %v1456_v1 = vpop.f32.mrf.mxu0 }
 0x3bf   :  { %1235 = vst [vmem:[#allocation7] sm:$0xff] %v1230_v0 }
 0x3c0   :  { %v1232_v2 = vpop.f32.mrf.mxu0 }
 0x3c1   :  { %1701 = shalt.err (!%p1698_p0)
}
 0x3c2   :  { %1245 = dma.vmem_to_hbm [thread:$0]  %s1243_s7, 128, %s1875_s9, [#allocation4]   ;;  %v1457_v3 = vpop.f32.mrf.mxu0 }
 0x3c3   :  { %1714 = dma.done.wait [#allocation4], 128  }
 0x3c4   :  { %1715 = vsyncadd [#allocation4], 4294967168 }
 0x3c5   :  { %1249 = vsyncpa [#allocation3], 1 }
 0x3c6   :  { %1250 = vsyncpa [#allocation6], 1 }
 0x3c7   :  { %1251 = vsyncpa [#allocation4], 1 }

</bundles_post_ra>
